<compile_context>
chip_gen: v5e
topology: v5e:2x2
jax: 0.10.0
libtpu: 0.0.40
codegen_flags: <defaults>
</compile_context>

<pallas_src>
import jax
import jax.numpy as jnp
from jax.experimental import pallas as pl
from jax.experimental.pallas import tpu as pltpu


# ------------------------------ fused kernel --------------------------------

def clause_hypergraph_kernel(h0_ref, q_ref, w1_ref, b1_ref, w2_ref, b2_ref,
                             x_ref, wm_ref, bm_ref, wm2_ref, bm2_ref,
                             wgx_ref, wgh_ref, bgate_ref,
                             gf_ref, g_ref,
                             h_scratch):
    f32 = jnp.float32

    # ---- Stage 1: folded (GraphConv -> HypergraphConv) x2, relu + residual.
    # Recomputed per grid step (cheap) so the batch axis is safely "parallel".
    h0 = h0_ref[...]          # [NT, E]
    Q = q_ref[...]            # [NT, NT]

    def layer(h, w_ref, b_ref):
        hw = jnp.dot(h, w_ref[...], preferred_element_type=f32)       # [NT, E]
        return jnp.dot(Q, hw, preferred_element_type=f32) + b_ref[...]

    h = jnp.maximum(layer(h0, w1_ref, b1_ref), 0.0) + h0
    h = jnp.maximum(layer(h, w2_ref, b2_ref), 0.0) + h0
    h_scratch[...] = h

    # ---- per-batch node slice (dgl.batch layout: graph b owns rows [b*N, (b+1)*N)).
    b = pl.program_id(0)
    n_nodes = gf_ref.shape[1]
    start = pl.multiple_of(b * n_nodes, 8)
    gf = h_scratch[pl.ds(start, n_nodes), :]                          # [N, E]
    gf_ref[0] = gf

    # ---- Stage 2: cross attention + gating for batch b.
    x = x_ref[0]                                                      # [S, Ee]
    xm = jnp.maximum(
        jnp.dot(x, wm_ref[...], preferred_element_type=f32) + bm_ref[...], 0.0)
    gm = jnp.maximum(
        jnp.dot(gf, wm2_ref[...], preferred_element_type=f32) + bm2_ref[...], 0.0)

    # C = xm @ gm^T, contracting the shared E dim (no materialized transpose).
    C = jax.lax.dot_general(xm, gm, (((1,), (1,)), ((), ())),
                            preferred_element_type=f32)               # [S, N]
    C = C - jnp.max(C, axis=-1, keepdims=True)
    e = jnp.exp(C)
    inv = pl.reciprocal(jnp.sum(e, axis=-1, keepdims=True), approx=True)
    Pm = e * inv                                                      # softmax over nodes
    H = jnp.dot(Pm, gf, preferred_element_type=f32)                   # [S, E]

    # Packed gate projection: first O/2 lanes -> sigmoid (Ws), last O/2 -> tanh (Wt).
    pre = (jnp.dot(x, wgx_ref[...], preferred_element_type=f32)
           + jnp.dot(H, wgh_ref[...], preferred_element_type=f32)
           + bgate_ref[...])                                          # [S, O]
    lane = jax.lax.broadcasted_iota(jnp.int32, pre.shape, 1)
    half = g_ref.shape[2] // 2
    g_ref[0] = jnp.where(lane < half, jax.nn.sigmoid(pre), jnp.tanh(pre))


# -------------------------------- wrapper ------------------------------------

def run_clause_hypergraph(x, h0, Q, W1, bias1, W2, bias2, attn_params,
                          n_nodes, output_size):
    (wm, bm, wm2, bm2, wgx, wgh, bgate) = attn_params
    B, S, Ee = x.shape
    NT, E = h0.shape
    N, O = n_nodes, output_size

    def full(arr):
        zeros = (0,) * arr.ndim
        return pl.BlockSpec(arr.shape, lambda b: zeros)

    return pl.pallas_call(
        clause_hypergraph_kernel,
        out_shape=(jax.ShapeDtypeStruct((B, N, E), jnp.float32),
                   jax.ShapeDtypeStruct((B, S, O), jnp.float32)),
        grid=(B,),
        in_specs=[
            full(h0), full(Q), full(W1), full(bias1), full(W2), full(bias2),
            pl.BlockSpec((1, S, Ee), lambda b: (b, 0, 0)),
            full(wm), full(bm), full(wm2), full(bm2),
            full(wgx), full(wgh), full(bgate),
        ],
        out_specs=(
            pl.BlockSpec((1, N, E), lambda b: (b, 0, 0)),
            pl.BlockSpec((1, S, O), lambda b: (b, 0, 0)),
        ),
        scratch_shapes=[pltpu.VMEM((NT, E), jnp.float32)],
        compiler_params=pltpu.CompilerParams(dimension_semantics=("parallel",)),
    )(h0, Q, W1, bias1, W2, bias2, x, wm, bm, wm2, bm2, wgx, wgh, bgate)


# ------------------------------ pure-JAX ref ---------------------------------

def reference(h0, A, P, gparams, x, aparams, B, N, E, output_size):
    """Original (unfolded, unpacked) Clause_Hypergraph math; verifies the fold."""
    HI = jax.lax.Precision.HIGHEST
    (wg1, bg1, wh1, bh1, wg2, bg2, wh2, bh2) = gparams
    (wm, bm, wm2, bm2, wsx, wsh, bs_, wtx, wth, bt) = aparams

    def layer(h, wg, bg, wh, bh):
        h = jnp.dot(A, jnp.dot(h, wg, precision=HI), precision=HI) + bg
        h = jnp.dot(P, jnp.dot(h, wh, precision=HI), precision=HI) + bh
        return h

    h = layer(h0, wg1, bg1, wh1, bh1)
    h = jnp.maximum(h, 0.0) + h0
    h = layer(h, wg2, bg2, wh2, bh2)
    h = jnp.maximum(h, 0.0) + h0

    gf = h.reshape(B, N, E)
    xm = jnp.maximum(jnp.einsum('bse,ek->bsk', x, wm, precision=HI) + bm, 0.0)
    gm = jnp.maximum(jnp.einsum('bne,ek->bnk', gf, wm2, precision=HI) + bm2, 0.0)
    C = jnp.einsum('bsk,bnk->bsn', xm, gm, precision=HI)
    Pm = jax.nn.softmax(C, axis=-1)
    H = jnp.einsum('bsn,bne->bse', Pm, gf, precision=HI)
    cat = jnp.concatenate([x, H], axis=-1)
    Ws_full = jnp.concatenate([wsx, wsh], axis=0)
    Wt_full = jnp.concatenate([wtx, wth], axis=0)
    G1 = jax.nn.sigmoid(jnp.einsum('bsf,fo->bso', cat, Ws_full, precision=HI) + bs_)
    G2 = jnp.tanh(jnp.einsum('bsf,fo->bso', cat, Wt_full, precision=HI) + bt)
    return gf, jnp.concatenate([G1, G2], axis=-1)


# --------------------------------- main ---------------------------------------

def xavier_uniform(key, shape):
    fan_in, fan_out = shape[0], shape[1]
    bound = (6.0 / (fan_in + fan_out)) ** 0.5
    return jax.random.uniform(key, shape, jnp.float32, -bound, bound)


if __name__ == "__main__":
    # Sizes implied by the module:
    B = 2            # batch (len(graph))
    E = 32           # args.embed_size
    Ee = 32          # encoder_size (== embed_size so doc features feed graph nodes)
    O = 16           # output_size (Ws/Wt each produce O/2 = 8)
    S = 8            # query sequence length of x
    T = 24           # document length
    n_codes, n_sent, n_clause = 4, 6, 6
    N = n_codes + n_sent + n_clause            # nodes per graph = 16
    NT = B * N                                 # batched nodes = 32
    M = 20                                     # number of hyperedges

    HI = jax.lax.Precision.HIGHEST             # f32-exact XLA matmuls host-side
    keys = jax.random.split(jax.random.PRNGKey(0), 32)

    # ---- inputs --------------------------------------------------------------
    x = jax.random.normal(keys[0], (B, S, Ee), jnp.float32)
    document_embedding = jax.random.normal(keys[1], (B, T, Ee), jnp.float32)

    # word_rep(code_descriptions).mean(dim=1) -> deterministic embedding-table mean (glue)
    vocab, tok_len = 50, 5
    emb_table = xavier_uniform(keys[2], (vocab, E))
    code_tokens = (jnp.arange(n_codes * tok_len).reshape(n_codes, tok_len) * 7 + 3) % vocab
    code_embedding = emb_table[code_tokens].mean(axis=1)              # [n_codes, E]

    # sentence / clause span means over document_embedding (glue)
    sent_feats, clause_feats = [], []
    for i in range(B):
        sf = jnp.stack([document_embedding[i, 4 * j:4 * j + 4].mean(axis=0)
                        for j in range(n_sent)])
        cf = jnp.stack([document_embedding[i, 3 * j:3 * j + 3].mean(axis=0)
                        for j in range(n_clause)])
        sent_feats.append(sf)
        clause_feats.append(cf)
    node_feature_row = jnp.concatenate(
        [jnp.concatenate([code_embedding, sent_feats[i], clause_feats[i]], axis=0)
         for i in range(B)], axis=0).astype(jnp.float32)              # [NT, E]

    # ---- batched graph adjacency (dgl.batch -> block diag), norm='both' ------
    Ag = jnp.zeros((N, N), jnp.float32)
    idx = jnp.arange(N)
    Ag = Ag.at[idx, (idx + 1) % N].set(1.0)
    Ag = Ag.at[(idx + 1) % N, idx].set(1.0)
    Ag = Ag.at[idx, (idx + 4) % N].set(1.0)
    Ag = Ag.at[(idx + 4) % N, idx].set(1.0)
    deg = jnp.clip(Ag.sum(axis=1), 1.0, None)
    dinv = 1.0 / jnp.sqrt(deg)
    Ag_norm = dinv[:, None] * Ag * dinv[None, :]
    A_norm = jax.scipy.linalg.block_diag(*([Ag_norm] * B)).astype(jnp.float32)

    # ---- hypergraph propagation P = D^-1 H B^-1 H^T (hyperedge_weight=None) ----
    hyperedge_weight = jnp.array(  # kept for fidelity; forward passes None, so unused
        [0.009004716, 0.056391828, 0.007613417, 0.075299542, 0.023866388,
         0.011534642, 0.451142716, 0.025067102, 0.011982863, 0.06889337,
         0.005538151, 0.029742016, 0.043025025, 0.030525322, 0.00272189,
         0.015106892, 0.072077554, 0.020709798, 0.015994689, 0.023762082],
        jnp.float32)
    Hinc = jnp.zeros((NT, M), jnp.float32)
    nidx = jnp.arange(NT)
    Hinc = Hinc.at[nidx, nidx % M].set(1.0)
    Hinc = Hinc.at[nidx, (nidx * 7 + 3) % M].set(1.0)
    node_deg = jnp.clip(Hinc.sum(axis=1), 1.0, None)
    edge_deg = jnp.clip(Hinc.sum(axis=0), 1.0, None)
    P_hyper = ((Hinc / node_deg[:, None]) @ (Hinc / edge_deg[None, :]).T).astype(jnp.float32)

    # ---- parameters (xavier_uniform_, small-uniform biases), stored [in, out] ----
    def bias(key, n, fan_in):
        b = 1.0 / (fan_in ** 0.5)
        return jax.random.uniform(key, (1, n), jnp.float32, -b, b)

    wg1 = xavier_uniform(keys[3], (E, E)); bg1 = bias(keys[4], E, E)
    wh1 = xavier_uniform(keys[5], (E, E)); bh1 = bias(keys[6], E, E)
    wg2 = xavier_uniform(keys[7], (E, E)); bg2 = bias(keys[8], E, E)
    wh2 = xavier_uniform(keys[9], (E, E)); bh2 = bias(keys[10], E, E)
    gparams = (wg1, bg1, wh1, bh1, wg2, bg2, wh2, bh2)

    wm = xavier_uniform(keys[11], (Ee, E));  bm = bias(keys[12], E, Ee)
    wm2 = xavier_uniform(keys[13], (E, E));  bm2 = bias(keys[14], E, E)
    # Ws / Wt split into x-part / H-part, stored [in, out] (math identical to torch Linear)
    ws_full = xavier_uniform(keys[15], (Ee + E, O // 2)); bs_ = bias(keys[16], O // 2, Ee + E)
    wt_full = xavier_uniform(keys[17], (Ee + E, O // 2)); bt = bias(keys[18], O // 2, Ee + E)
    wsx, wsh = ws_full[:Ee], ws_full[Ee:]
    wtx, wth = wt_full[:Ee], wt_full[Ee:]
    aparams = (wm, bm, wm2, bm2, wsx, wsh, bs_, wtx, wth, bt)

    # ---- exact algebraic fold of the graph/hypergraph layers (host-side) -----
    #   layer(h) = P @ (A @ (h Wg) + bg) @ Wh + bh = Q h W + rowsum(P)*(bg Wh) + bh
    Q = jnp.dot(P_hyper, A_norm, precision=HI)
    prow = P_hyper.sum(axis=1, keepdims=True)                          # [NT, 1]
    W1 = jnp.dot(wg1, wh1, precision=HI)
    bias1 = prow * jnp.dot(bg1, wh1, precision=HI) + bh1               # [NT, E]
    W2 = jnp.dot(wg2, wh2, precision=HI)
    bias2 = prow * jnp.dot(bg2, wh2, precision=HI) + bh2               # [NT, E]

    # ---- pack the gate projections: [sigmoid half | tanh half] along lanes ----
    wgx = jnp.concatenate([wsx, wtx], axis=1)                          # [Ee, O]
    wgh = jnp.concatenate([wsh, wth], axis=1)                          # [E,  O]
    bgate = jnp.concatenate([bs_, bt], axis=1)                         # [1,  O]
    attn_params = (wm, bm, wm2, bm2, wgx, wgh, bgate)

    # ---- run the fused Pallas kernel ------------------------------------------
    graph_feature, G = run_clause_hypergraph(
        x, node_feature_row, Q, W1, bias1, W2, bias2, attn_params, N, O)
    G = jax.block_until_ready(G)
    graph_feature = jax.block_until_ready(graph_feature)

    # ---- check against the original (unfolded) pure-JAX reference -------------
    # Tolerances: the fold/packing are mathematically exact; slack covers f32
    # re-association from the reordered matmuls and the EUP approx reciprocal
    # used in the softmax normalization.
    gf_ref, G_ref = reference(node_feature_row, A_norm, P_hyper, gparams,
                              x, aparams, B, N, E, O)
    assert G.shape == (B, S, O)
    assert jnp.allclose(graph_feature, gf_ref, atol=1e-3, rtol=1e-3)
    assert jnp.allclose(G, G_ref, atol=1e-2, rtol=1e-2)

    print("KERNEL_OK")
</pallas_src>

<mosaic_0001>
module attributes {stable_mosaic.version = 11 : i64} {
  func.func @clause_hypergraph_kernel(%arg0: i32, %arg1: memref<32x32xf32, #tpu.memory_space<vmem>>, %arg2: memref<32x32xf32, #tpu.memory_space<vmem>>, %arg3: memref<32x32xf32, #tpu.memory_space<vmem>>, %arg4: memref<32x32xf32, #tpu.memory_space<vmem>>, %arg5: memref<32x32xf32, #tpu.memory_space<vmem>>, %arg6: memref<32x32xf32, #tpu.memory_space<vmem>>, %arg7: memref<1x8x32xf32, #tpu.memory_space<vmem>>, %arg8: memref<32x32xf32, #tpu.memory_space<vmem>>, %arg9: memref<1x32xf32, #tpu.memory_space<vmem>>, %arg10: memref<32x32xf32, #tpu.memory_space<vmem>>, %arg11: memref<1x32xf32, #tpu.memory_space<vmem>>, %arg12: memref<32x16xf32, #tpu.memory_space<vmem>>, %arg13: memref<32x16xf32, #tpu.memory_space<vmem>>, %arg14: memref<1x16xf32, #tpu.memory_space<vmem>>, %arg15: memref<1x16x32xf32, #tpu.memory_space<vmem>>, %arg16: memref<1x8x16xf32, #tpu.memory_space<vmem>>, %arg17: memref<32x32xf32, #tpu.memory_space<vmem>>) attributes {dimension_semantics = [#tpu.dimension_semantics<parallel>], iteration_bounds = array<i64: 2>, scalar_prefetch = 0 : i64, scratch_operands = 1 : i64, tpu.core_type = #tpu.core_type<tc>, window_params = [{pipeline_mode = #tpu.pipeline_mode<synchronous>, transform_indices = @transform_0, window_bounds = array<i64: 32, 32>}, {pipeline_mode = #tpu.pipeline_mode<synchronous>, transform_indices = @transform_1, window_bounds = array<i64: 32, 32>}, {pipeline_mode = #tpu.pipeline_mode<synchronous>, transform_indices = @transform_2, window_bounds = array<i64: 32, 32>}, {pipeline_mode = #tpu.pipeline_mode<synchronous>, transform_indices = @transform_3, window_bounds = array<i64: 32, 32>}, {pipeline_mode = #tpu.pipeline_mode<synchronous>, transform_indices = @transform_4, window_bounds = array<i64: 32, 32>}, {pipeline_mode = #tpu.pipeline_mode<synchronous>, transform_indices = @transform_5, window_bounds = array<i64: 32, 32>}, {transform_indices = @transform_6, window_bounds = array<i64: 1, 8, 32>}, {pipeline_mode = #tpu.pipeline_mode<synchronous>, transform_indices = @transform_7, window_bounds = array<i64: 32, 32>}, {pipeline_mode = #tpu.pipeline_mode<synchronous>, transform_indices = @transform_8, window_bounds = array<i64: 1, 32>}, {pipeline_mode = #tpu.pipeline_mode<synchronous>, transform_indices = @transform_9, window_bounds = array<i64: 32, 32>}, {pipeline_mode = #tpu.pipeline_mode<synchronous>, transform_indices = @transform_10, window_bounds = array<i64: 1, 32>}, {pipeline_mode = #tpu.pipeline_mode<synchronous>, transform_indices = @transform_11, window_bounds = array<i64: 32, 16>}, {pipeline_mode = #tpu.pipeline_mode<synchronous>, transform_indices = @transform_12, window_bounds = array<i64: 32, 16>}, {pipeline_mode = #tpu.pipeline_mode<synchronous>, transform_indices = @transform_13, window_bounds = array<i64: 1, 16>}, {transform_indices = @transform_14, window_bounds = array<i64: 1, 16, 32>}, {transform_indices = @transform_15, window_bounds = array<i64: 1, 8, 16>}]} {
    %c0 = arith.constant 0 : index
    %c0_0 = arith.constant 0 : index
    %0 = vector.load %arg1[%c0, %c0_0] : memref<32x32xf32, #tpu.memory_space<vmem>>, vector<32x32xf32>
    %c0_1 = arith.constant 0 : index
    %c0_2 = arith.constant 0 : index
    %1 = vector.load %arg2[%c0_1, %c0_2] : memref<32x32xf32, #tpu.memory_space<vmem>>, vector<32x32xf32>
    %c0_3 = arith.constant 0 : index
    %c0_4 = arith.constant 0 : index
    %2 = vector.load %arg3[%c0_3, %c0_4] : memref<32x32xf32, #tpu.memory_space<vmem>>, vector<32x32xf32>
    %cst = arith.constant dense<0.000000e+00> : vector<32x32xf32>
    %3 = tpu.matmul %0, %2, %cst {dimension_numbers = #tpu.dot_dimension_numbers<[1], [0], [0], [1], [0, 0, 1, 1], [], []>} : vector<32x32xf32>, vector<32x32xf32>, vector<32x32xf32> -> vector<32x32xf32>
    %cst_5 = arith.constant dense<0.000000e+00> : vector<32x32xf32>
    %4 = tpu.matmul %1, %3, %cst_5 {dimension_numbers = #tpu.dot_dimension_numbers<[1], [0], [0], [1], [0, 0, 1, 1], [], []>} : vector<32x32xf32>, vector<32x32xf32>, vector<32x32xf32> -> vector<32x32xf32>
    %c0_6 = arith.constant 0 : index
    %c0_7 = arith.constant 0 : index
    %5 = vector.load %arg4[%c0_6, %c0_7] : memref<32x32xf32, #tpu.memory_space<vmem>>, vector<32x32xf32>
    %6 = arith.addf %4, %5 : vector<32x32xf32>
    %cst_8 = arith.constant 0.000000e+00 : f32
    %7 = vector.broadcast %cst_8 : f32 to vector<32x32xf32>
    %8 = arith.maximumf %6, %7 : vector<32x32xf32>
    %9 = arith.addf %8, %0 : vector<32x32xf32>
    %c0_9 = arith.constant 0 : index
    %c0_10 = arith.constant 0 : index
    %10 = vector.load %arg5[%c0_9, %c0_10] : memref<32x32xf32, #tpu.memory_space<vmem>>, vector<32x32xf32>
    %cst_11 = arith.constant dense<0.000000e+00> : vector<32x32xf32>
    %11 = tpu.matmul %9, %10, %cst_11 {dimension_numbers = #tpu.dot_dimension_numbers<[1], [0], [0], [1], [0, 0, 1, 1], [], []>} : vector<32x32xf32>, vector<32x32xf32>, vector<32x32xf32> -> vector<32x32xf32>
    %cst_12 = arith.constant dense<0.000000e+00> : vector<32x32xf32>
    %12 = tpu.matmul %1, %11, %cst_12 {dimension_numbers = #tpu.dot_dimension_numbers<[1], [0], [0], [1], [0, 0, 1, 1], [], []>} : vector<32x32xf32>, vector<32x32xf32>, vector<32x32xf32> -> vector<32x32xf32>
    %c0_13 = arith.constant 0 : index
    %c0_14 = arith.constant 0 : index
    %13 = vector.load %arg6[%c0_13, %c0_14] : memref<32x32xf32, #tpu.memory_space<vmem>>, vector<32x32xf32>
    %14 = arith.addf %12, %13 : vector<32x32xf32>
    %cst_15 = arith.constant 0.000000e+00 : f32
    %15 = vector.broadcast %cst_15 : f32 to vector<32x32xf32>
    %16 = arith.maximumf %14, %15 : vector<32x32xf32>
    %17 = arith.addf %16, %0 : vector<32x32xf32>
    %c0_16 = arith.constant 0 : index
    %c0_17 = arith.constant 0 : index
    %18 = vector.load %arg17[%c0_16, %c0_17] : memref<32x32xf32, #tpu.memory_space<vmem>>, vector<32x32xf32>
    tpu.vector_store %arg17[%c0_16, %c0_17], %17 {strides = array<i32>} : memref<32x32xf32, #tpu.memory_space<vmem>>, vector<32x32xf32>,
    %c16_i32 = arith.constant 16 : i32
    %19 = arith.muli %arg0, %c16_i32 : i32
    %20 = tpu.assume_multiple %19, 8 : i32
    %21 = arith.index_cast %20 : i32 to index
    %c0_18 = arith.constant 0 : index
    %22 = vector.load %arg17[%21, %c0_18] : memref<32x32xf32, #tpu.memory_space<vmem>>, vector<16x32xf32>
    %c0_19 = arith.constant 0 : index
    %c0_20 = arith.constant 0 : index
    %c0_21 = arith.constant 0 : index
    %23 = vector.load %arg15[%c0_19, %c0_20, %c0_21] : memref<1x16x32xf32, #tpu.memory_space<vmem>>, vector<1x16x32xf32>
    %24 = vector.shape_cast %23 : vector<1x16x32xf32> to vector<16x32xf32>
    %25 = vector.shape_cast %22 : vector<16x32xf32> to vector<1x16x32xf32>
    tpu.vector_store %arg15[%c0_19, %c0_20, %c0_21], %25 {strides = array<i32>} : memref<1x16x32xf32, #tpu.memory_space<vmem>>, vector<1x16x32xf32>,
    %c0_22 = arith.constant 0 : index
    %c0_23 = arith.constant 0 : index
    %c0_24 = arith.constant 0 : index
    %26 = vector.load %arg7[%c0_22, %c0_23, %c0_24] : memref<1x8x32xf32, #tpu.memory_space<vmem>>, vector<1x8x32xf32>
    %27 = vector.shape_cast %26 : vector<1x8x32xf32> to vector<8x32xf32>
    %c0_25 = arith.constant 0 : index
    %c0_26 = arith.constant 0 : index
    %28 = vector.load %arg8[%c0_25, %c0_26] : memref<32x32xf32, #tpu.memory_space<vmem>>, vector<32x32xf32>
    %cst_27 = arith.constant dense<0.000000e+00> : vector<8x32xf32>
    %29 = tpu.matmul %27, %28, %cst_27 {dimension_numbers = #tpu.dot_dimension_numbers<[1], [0], [0], [1], [0, 0, 1, 1], [], []>} : vector<8x32xf32>, vector<32x32xf32>, vector<8x32xf32> -> vector<8x32xf32>
    %c0_28 = arith.constant 0 : index
    %c0_29 = arith.constant 0 : index
    %30 = vector.load %arg9[%c0_28, %c0_29] : memref<1x32xf32, #tpu.memory_space<vmem>>, vector<1x32xf32>
    %31 = vector.broadcast %30 : vector<1x32xf32> to vector<8x32xf32>
    %32 = arith.addf %29, %31 : vector<8x32xf32>
    %cst_30 = arith.constant 0.000000e+00 : f32
    %33 = vector.broadcast %cst_30 : f32 to vector<8x32xf32>
    %34 = arith.maximumf %32, %33 : vector<8x32xf32>
    %c0_31 = arith.constant 0 : index
    %c0_32 = arith.constant 0 : index
    %35 = vector.load %arg10[%c0_31, %c0_32] : memref<32x32xf32, #tpu.memory_space<vmem>>, vector<32x32xf32>
    %cst_33 = arith.constant dense<0.000000e+00> : vector<16x32xf32>
    %36 = tpu.matmul %22, %35, %cst_33 {dimension_numbers = #tpu.dot_dimension_numbers<[1], [0], [0], [1], [0, 0, 1, 1], [], []>} : vector<16x32xf32>, vector<32x32xf32>, vector<16x32xf32> -> vector<16x32xf32>
    %c0_34 = arith.constant 0 : index
    %c0_35 = arith.constant 0 : index
    %37 = vector.load %arg11[%c0_34, %c0_35] : memref<1x32xf32, #tpu.memory_space<vmem>>, vector<1x32xf32>
    %38 = vector.broadcast %37 : vector<1x32xf32> to vector<16x32xf32>
    %39 = arith.addf %36, %38 : vector<16x32xf32>
    %cst_36 = arith.constant 0.000000e+00 : f32
    %40 = vector.broadcast %cst_36 : f32 to vector<16x32xf32>
    %41 = arith.maximumf %39, %40 : vector<16x32xf32>
    %cst_37 = arith.constant dense<0.000000e+00> : vector<8x16xf32>
    %42 = tpu.matmul %34, %41, %cst_37 {dimension_numbers = #tpu.dot_dimension_numbers<[1], [1], [0], [0], [0, 0, 1, 0], [], []>} : vector<8x32xf32>, vector<16x32xf32>, vector<8x16xf32> -> vector<8x16xf32>
    %cst_38 = arith.constant dense<0xFF800000> : vector<8xf32>
    %43 = vector.multi_reduction <maximumf>, %42, %cst_38 [1] : vector<8x16xf32> to vector<8xf32>
    %44 = vector.shape_cast %43 : vector<8xf32> to vector<8x1xf32>
    %45 = vector.broadcast %44 : vector<8x1xf32> to vector<8x16xf32>
    %46 = arith.subf %42, %45 : vector<8x16xf32>
    %47 = math.exp %46 : vector<8x16xf32>
    %cst_39 = arith.constant dense<0.000000e+00> : vector<8xf32>
    %48 = vector.multi_reduction <add>, %47, %cst_39 [1] : vector<8x16xf32> to vector<8xf32>
    %49 = vector.shape_cast %48 : vector<8xf32> to vector<8x1xf32>
    %50 = tpu.reciprocal %49 {approx = true} : vector<8x1xf32> -> vector<8x1xf32>
    %51 = vector.broadcast %50 : vector<8x1xf32> to vector<8x16xf32>
    %52 = arith.mulf %47, %51 : vector<8x16xf32>
    %cst_40 = arith.constant dense<0.000000e+00> : vector<8x32xf32>
    %53 = tpu.matmul %52, %22, %cst_40 {dimension_numbers = #tpu.dot_dimension_numbers<[1], [0], [0], [1], [0, 0, 1, 1], [], []>} : vector<8x16xf32>, vector<16x32xf32>, vector<8x32xf32> -> vector<8x32xf32>
    %c0_41 = arith.constant 0 : index
    %c0_42 = arith.constant 0 : index
    %54 = vector.load %arg12[%c0_41, %c0_42] : memref<32x16xf32, #tpu.memory_space<vmem>>, vector<32x16xf32>
    %cst_43 = arith.constant dense<0.000000e+00> : vector<8x16xf32>
    %55 = tpu.matmul %27, %54, %cst_43 {dimension_numbers = #tpu.dot_dimension_numbers<[1], [0], [0], [1], [0, 0, 1, 1], [], []>} : vector<8x32xf32>, vector<32x16xf32>, vector<8x16xf32> -> vector<8x16xf32>
    %c0_44 = arith.constant 0 : index
    %c0_45 = arith.constant 0 : index
    %56 = vector.load %arg13[%c0_44, %c0_45] : memref<32x16xf32, #tpu.memory_space<vmem>>, vector<32x16xf32>
    %cst_46 = arith.constant dense<0.000000e+00> : vector<8x16xf32>
    %57 = tpu.matmul %53, %56, %cst_46 {dimension_numbers = #tpu.dot_dimension_numbers<[1], [0], [0], [1], [0, 0, 1, 1], [], []>} : vector<8x32xf32>, vector<32x16xf32>, vector<8x16xf32> -> vector<8x16xf32>
    %58 = arith.addf %55, %57 : vector<8x16xf32>
    %c0_47 = arith.constant 0 : index
    %c0_48 = arith.constant 0 : index
    %59 = vector.load %arg14[%c0_47, %c0_48] : memref<1x16xf32, #tpu.memory_space<vmem>>, vector<1x16xf32>
    %60 = vector.broadcast %59 : vector<1x16xf32> to vector<8x16xf32>
    %61 = arith.addf %58, %60 : vector<8x16xf32>
    %62 = tpu.iota {dimensions = array<i32: 1>} : vector<8x16xi32>
    %c8_i32 = arith.constant 8 : i32
    %63 = vector.broadcast %c8_i32 : i32 to vector<8x16xi32>
    %64 = arith.cmpi slt, %62, %63 : vector<8x16xi32>
    %65 = arith.negf %61 : vector<8x16xf32>
    %66 = math.exp %65 : vector<8x16xf32>
    %cst_49 = arith.constant 1.000000e+00 : f32
    %67 = vector.broadcast %cst_49 : f32 to vector<8x16xf32>
    %68 = arith.addf %67, %66 : vector<8x16xf32>
    %69 = arith.divf %67, %68 : vector<8x16xf32>
    %70 = math.tanh %61 : vector<8x16xf32>
    %71 = arith.select %64, %69, %70 : vector<8x16xi1>, vector<8x16xf32>
    %c0_50 = arith.constant 0 : index
    %c0_51 = arith.constant 0 : index
    %c0_52 = arith.constant 0 : index
    %72 = vector.load %arg16[%c0_50, %c0_51, %c0_52] : memref<1x8x16xf32, #tpu.memory_space<vmem>>, vector<1x8x16xf32>
    %73 = vector.shape_cast %72 : vector<1x8x16xf32> to vector<8x16xf32>
    %74 = vector.shape_cast %71 : vector<8x16xf32> to vector<1x8x16xf32>
    tpu.vector_store %arg16[%c0_50, %c0_51, %c0_52], %74 {strides = array<i32>} : memref<1x8x16xf32, #tpu.memory_space<vmem>>, vector<1x8x16xf32>,
    return
  }
  func.func @transform_0(%arg0: i32) -> (i32, i32) {
    %c0_i32 = arith.constant 0 : i32
    %c0_i32_0 = arith.constant 0 : i32
    %c0_i32_1 = arith.constant 0 : i32
    return %c0_i32, %c0_i32_0 : i32, i32
  }
  func.func @transform_1(%arg0: i32) -> (i32, i32) {
    %c0_i32 = arith.constant 0 : i32
    %c0_i32_0 = arith.constant 0 : i32
    %c0_i32_1 = arith.constant 0 : i32
    return %c0_i32, %c0_i32_0 : i32, i32
  }
  func.func @transform_2(%arg0: i32) -> (i32, i32) {
    %c0_i32 = arith.constant 0 : i32
    %c0_i32_0 = arith.constant 0 : i32
    %c0_i32_1 = arith.constant 0 : i32
    return %c0_i32, %c0_i32_0 : i32, i32
  }
  func.func @transform_3(%arg0: i32) -> (i32, i32) {
    %c0_i32 = arith.constant 0 : i32
    %c0_i32_0 = arith.constant 0 : i32
    %c0_i32_1 = arith.constant 0 : i32
    return %c0_i32, %c0_i32_0 : i32, i32
  }
  func.func @transform_4(%arg0: i32) -> (i32, i32) {
    %c0_i32 = arith.constant 0 : i32
    %c0_i32_0 = arith.constant 0 : i32
    %c0_i32_1 = arith.constant 0 : i32
    return %c0_i32, %c0_i32_0 : i32, i32
  }
  func.func @transform_5(%arg0: i32) -> (i32, i32) {
    %c0_i32 = arith.constant 0 : i32
    %c0_i32_0 = arith.constant 0 : i32
    %c0_i32_1 = arith.constant 0 : i32
    return %c0_i32, %c0_i32_0 : i32, i32
  }
  func.func @transform_6(%arg0: i32) -> (i32, i32, i32) {
    %c0_i32 = arith.constant 0 : i32
    %c0_i32_0 = arith.constant 0 : i32
    %c0_i32_1 = arith.constant 0 : i32
    return %arg0, %c0_i32, %c0_i32_0 : i32, i32, i32
  }
  func.func @transform_7(%arg0: i32) -> (i32, i32) {
    %c0_i32 = arith.constant 0 : i32
    %c0_i32_0 = arith.constant 0 : i32
    %c0_i32_1 = arith.constant 0 : i32
    return %c0_i32, %c0_i32_0 : i32, i32
  }
  func.func @transform_8(%arg0: i32) -> (i32, i32) {
    %c0_i32 = arith.constant 0 : i32
    %c0_i32_0 = arith.constant 0 : i32
    %c0_i32_1 = arith.constant 0 : i32
    return %c0_i32, %c0_i32_0 : i32, i32
  }
  func.func @transform_9(%arg0: i32) -> (i32, i32) {
    %c0_i32 = arith.constant 0 : i32
    %c0_i32_0 = arith.constant 0 : i32
    %c0_i32_1 = arith.constant 0 : i32
    return %c0_i32, %c0_i32_0 : i32, i32
  }
  func.func @transform_10(%arg0: i32) -> (i32, i32) {
    %c0_i32 = arith.constant 0 : i32
    %c0_i32_0 = arith.constant 0 : i32
    %c0_i32_1 = arith.constant 0 : i32
    return %c0_i32, %c0_i32_0 : i32, i32
  }
  func.func @transform_11(%arg0: i32) -> (i32, i32) {
    %c0_i32 = arith.constant 0 : i32
    %c0_i32_0 = arith.constant 0 : i32
    %c0_i32_1 = arith.constant 0 : i32
    return %c0_i32, %c0_i32_0 : i32, i32
  }
  func.func @transform_12(%arg0: i32) -> (i32, i32) {
    %c0_i32 = arith.constant 0 : i32
    %c0_i32_0 = arith.constant 0 : i32
    %c0_i32_1 = arith.constant 0 : i32
    return %c0_i32, %c0_i32_0 : i32, i32
  }
  func.func @transform_13(%arg0: i32) -> (i32, i32) {
    %c0_i32 = arith.constant 0 : i32
    %c0_i32_0 = arith.constant 0 : i32
    %c0_i32_1 = arith.constant 0 : i32
    return %c0_i32, %c0_i32_0 : i32, i32
  }
  func.func @transform_14(%arg0: i32) -> (i32, i32, i32) {
    %c0_i32 = arith.constant 0 : i32
    %c0_i32_0 = arith.constant 0 : i32
    %c0_i32_1 = arith.constant 0 : i32
    return %arg0, %c0_i32, %c0_i32_0 : i32, i32, i32
  }
  func.func @transform_15(%arg0: i32) -> (i32, i32, i32) {
    %c0_i32 = arith.constant 0 : i32
    %c0_i32_0 = arith.constant 0 : i32
    %c0_i32_1 = arith.constant 0 : i32
    return %arg0, %c0_i32, %c0_i32_0 : i32, i32, i32
  }
}

</mosaic_0001>

<bundles_post_ra>
// kernel: tpu_custom_call.1
= control target key start
LH: loop header
LB: loop body
LE: loop exit
PB: predicated region body
PF: predicated region fallthrough
CT: control target
= control target key end

     0   :  { %s2079_s0 = inlined_call_operand.vmem [shape: f32[32,32], index: 0, kind: input, shape index: {}]   ;;  %s2080_s1 = inlined_call_operand.vmem [shape: f32[32,32], index: 1, kind: input, shape index: {}]   ;;  %s2081_s2 = inlined_call_operand.hbm [shape: f32[32,32], index: 2, kind: input, shape index: {}]   ;;  %s2082_s3 = inlined_call_operand.hbm [shape: f32[32,32], index: 3, kind: input, shape index: {}]   ;;  %s2083_s4 = inlined_call_operand.hbm [shape: f32[32,32], index: 4, kind: input, shape index: {}]   ;;  %s2084_s5 = inlined_call_operand.hbm [shape: f32[32,32], index: 5, kind: input, shape index: {}]   ;;  %s2085_s6 = inlined_call_operand.vmem [shape: f32[2,8,32], index: 6, kind: input, shape index: {}]   ;;  %s2086_s7 = inlined_call_operand.hbm [shape: f32[32,32], index: 7, kind: input, shape index: {}]   ;;  %s2087_s8 = inlined_call_operand.vmem [shape: f32[1,32], index: 8, kind: input, shape index: {}]   ;;  %s2088_s9 = inlined_call_operand.hbm [shape: f32[32,32], index: 9, kind: input, shape index: {}]   ;;  %s2089_s10 = inlined_call_operand.vmem [shape: f32[1,32], index: 10, kind: input, shape index: {}]   ;;  %s2090_s11 = inlined_call_operand.vmem [shape: f32[32,16], index: 11, kind: input, shape index: {}]   ;;  %s2091_s12 = inlined_call_operand.vmem [shape: f32[32,16], index: 12, kind: input, shape index: {}]   ;;  %s2092_s13 = inlined_call_operand.vmem [shape: f32[1,16], index: 13, kind: input, shape index: {}]   ;;  %s2093_s14 = inlined_call_operand.hbm [shape: f32[2,16,32], index: 14, kind: output, shape index: {0}]   ;;  %s2094_s15 = inlined_call_operand.hbm [shape: f32[2,8,16], index: 15, kind: output, shape index: {1}]  }
   0x1   :  { %2102 = sst [smem:[#allocation29_spill]] %s2082_s3 }
   0x2   :  { %2103 = sst [smem:[#allocation30_spill]] %s2084_s5 }
   0x3   :  { %2104 = sst [smem:[#allocation31_spill]] %s2092_s13 }
   0x4   :  { %2105 = sst [smem:[#allocation32_spill]] %s2094_s15 }
   0x5   :  { %21 = vsyncpa [#allocation4], 0 }
   0x6   :  { %22 = vsyncpa [#allocation7], 0 }
   0x7   :  { %23 = vsyncpa [#allocation10], 0 }
   0x8   :  { %24 = vsyncpa [#allocation13], 0 }
   0x9   :  { %25 = vsyncpa [#allocation5], 0 }
   0xa   :  { %27 = vsyncpa [#allocation5 + $0x1], 0 }
   0xb   :  { %28 = vsyncpa [#allocation16], 0 }
   0xc   :  { %30 = vsyncpa [#allocation16 + $0x1], 0  ;;  %s1771_s18 = smov 0   ;;  %s1773_s19 = smov 0  }
   0xd   :  { %s1775_s20 = smov 0   ;;  %s1777_s21 = smov 0  }
   0xe LB: > { %2106 = sst [smem:[#allocation23_spill]] %s1667_s18  ;;  %s1792_s22 = sadd.s32 4294967295, %s1679_s21   ;;  %s1679_s21 = sphi %s1777_s21, %s2123_s21   ;;  %s1675_s20 = sphi %s1775_s20, %s2125_s20   ;;  %s1671_s19 = sphi %s1773_s19, %s2127_s19   ;;  %s1667_s18 = sphi %s1771_s18, %s2126_s18  }
   0xf   : > { %2107 = sst [smem:[#allocation24_spill]] %s1675_s20  ;;  %s1213_s23 = sadd.s32 4294967294, %s1679_s21  }
  0x10   : > { %2108 = sst [smem:[#allocation25_spill]] %s1679_s21  ;;  %s1796_s24 = sadd.s32 1, %s1679_s21  }
  0x11   : > { %2109 = sst [smem:[#allocation26_spill]] %s1796_s24  ;;  %s342_s25 = sadd.s32 1, %s1675_s20 }
  0x12   : > { %s339_s26 = ssub.s32 %s1679_s21, %s1796_s24  ;;  %p352_p0 = scmp.ne.s32.totalorder %s1675_s20, %s1671_s19 }
  0x13   : > { %p340_p1 = scmp.eq.s32.totalorder %s339_s26, 0  ;;  %p353_p2 = scmp.eq.s32.totalorder %s1792_s22, 1 }
  0x14   : > { %p358_p3 = scmp.ne.s32.totalorder %s1671_s19, %s1667_s18  ;;  %p359_p4 = scmp.eq.s32.totalorder %s1213_s23, 1 }
  0x15   : > { %s1807_s27 = scalar_select %p340_p1, %s1675_s20, %s342_s25  }
  0x16   : > { %p1809_p5 = por %p353_p2, %p352_p0  ;;  %p1813_p6 = por %p359_p4, %p358_p3 }
  0x17   : > { %2110 = sst [smem:[#allocation27_spill]] %s1807_s27  ;;  %p1214_p7 = scmp.ge.s32.totalorder %s1679_s21, 1 }
  0x18   : > { %s2112_s29 = scalar_select %p1813_p6, 1, 0 }
  0x19   : > { %p392_p8 = scmp.lt.s32.totalorder %s1679_s21, 3  ;;  %p1321_p9 = scmp.eq.s32.totalorder %s1792_s22, 0 }
  0x1a   : > { %2113 = sst [smem:[#allocation28_spill]] %s2112_s29  ;;  %s1681_s24 = smov [#allocation6]  }
  0x1b   : > { %p1820_p10 = pnand %p1214_p7, %p392_p8  ;;  %s2115_s3 = sld [smem:[#allocation29_spill]] }
  0x1c   : > { %s2116_s5 = sld [smem:[#allocation30_spill]]  ;;  %s425_s29 = sshll.u32 %s1681_s24, 4  ;;  %s426_s29 = int_to_ptr.vmem [resolvable:$true] %s425_s29 }
  0x1d   : > { %p1295_p11 = pneg %p1820_p10  ;;  %s1682_s16 = smov 128  }
  0x1e   : > { %s1683_s17 = smov 8   ;;  %s1684_s25 = smov [#allocation9]  }
  0x1f   : > { %p1834_p12 = pnand %p1321_p9, %p1295_p11  ;;  %s453_s26 = sshll.u32 %s1684_s25, 4  ;;  %s454_s26 = int_to_ptr.vmem [resolvable:$true] %s453_s26 }
  0x20   : > { %s409_s18 = sshll.u32 %s2081_s2, 4  ;;  %s437_s15 = sshll.u32 %s2083_s4, 4  ;;  %s410_s18 = int_to_ptr.hbm [resolvable:$true] %s409_s18  ;;  %s438_s15 = int_to_ptr.hbm [resolvable:$true] %s437_s15 }
  0x21   : > { %s423_s23 = sshll.u32 %s2115_s3, 4  ;;  %s1685_s13 = smov [#allocation3]   ;;  %s424_s23 = int_to_ptr.hbm [resolvable:$true] %s423_s23 }
  0x22   : > { %s451_s27 = sshll.u32 %s2116_s5, 4  ;;  %s1686_s3 = smov [#allocation8]   ;;  %s452_s27 = int_to_ptr.hbm [resolvable:$true] %s451_s27 }
  0x23   : > { %1301 = dma.hbm_to_vmem [thread:$0]  (!%p1834_p12), %s424_s23, 512, %s426_s29, [#allocation7], %s1682_s16, %s1682_s16, %s1683_s17  }
  0x24   : > { %1307 = dma.hbm_to_vmem [thread:$0]  (!%p1834_p12), %s452_s27, 512, %s454_s26, [#allocation10], %s1682_s16, %s1682_s16, %s1683_s17  }
  0x25   : > { %s411_s29 = sshll.u32 %s1685_s13, 4  ;;  %s439_s5 = sshll.u32 %s1686_s3, 4  ;;  %s412_s29 = int_to_ptr.vmem [resolvable:$true] %s411_s29  ;;  %s440_s5 = int_to_ptr.vmem [resolvable:$true] %s439_s5 }
  0x26   : > { %1298 = dma.hbm_to_vmem [thread:$0]  (!%p1834_p12), %s410_s18, 512, %s412_s29, [#allocation4], %s1682_s16, %s1682_s16, %s1683_s17  }
  0x27   : > { %s465_s27 = sshll.u32 %s2086_s7, 4  ;;  %s482_s26 = sshll.u32 %s2088_s9, 4  ;;  %s466_s27 = int_to_ptr.hbm [resolvable:$true] %s465_s27  ;;  %s483_s26 = int_to_ptr.hbm [resolvable:$true] %s482_s26 }
  0x28   : > { %1304 = dma.hbm_to_vmem [thread:$0]  (!%p1834_p12), %s438_s15, 512, %s440_s5, [#allocation7], %s1682_s16, %s1682_s16, %s1683_s17  }
  0x29   : > { %s1687_s24 = smov [#allocation11]   ;;  %s1688_s29 = smov [#allocation12]  }
  0x2a   : > { %s467_s18 = sshll.u32 %s1687_s24, 4  ;;  %s484_s3 = sshll.u32 %s1688_s29, 4  ;;  %s468_s18 = int_to_ptr.vmem [resolvable:$true] %s467_s18  ;;  %s485_s3 = int_to_ptr.vmem [resolvable:$true] %s484_s3 }
  0x2b   : > { %1310 = dma.hbm_to_vmem [thread:$0]  (!%p1834_p12), %s466_s27, 512, %s468_s18, [#allocation10], %s1682_s16, %s1682_s16, %s1683_s17  }
  0x2c   : > { %1313 = dma.hbm_to_vmem [thread:$0]  (!%p1834_p12), %s483_s26, 512, %s485_s3, [#allocation13], %s1682_s16, %s1682_s16, %s1683_s17  }
  0x2d   : > { %519 = sbr.rel (%p1820_p10) target bundleno = 1512 (0x5e8), region = 76 }
  0x32   : > { %1642 = dma.done.wait (%p1321_p9), [#allocation4], 512  }
  0x33   : > { %1644 = vsyncadd (%p1321_p9), [#allocation4], 4294966784 }
  0x34   : > { %1646 = dma.done.wait (%p1321_p9), [#allocation7], 1024  }
  0x35   : > { %1648 = vsyncadd (%p1321_p9), [#allocation7], 4294966272 }
  0x36   : > { %1650 = dma.done.wait (%p1321_p9), [#allocation10], 1024  }
  0x37   : > { %1652 = vsyncadd (%p1321_p9), [#allocation10], 4294966272 }
  0x38   : > { %1654 = dma.done.wait (%p1321_p9), [#allocation13], 512  }
  0x39   : > { %1656 = vsyncadd (%p1321_p9), [#allocation13], 4294966784  ;;  %v612_v0 = vld [vmem:[#allocation3 + $0x18] sm:$0xff]  ;;  %v611_v1 = vld [vmem:[#allocation3 + $0x10] sm:$0xff]  ;;  %vm613_vm0 = vcmask 261120   ;;  %p597_p13 = scmp.lt.s32.totalorder %s1792_s22, 1 }
  0x3a   : > { %638 = vmatpush.msra.mxu0 %v612_v0  ;;  %v610_v2 = vld [vmem:[#allocation3 + $0x8] sm:$0xff]  ;;  %v609_v3 = vld [vmem:[#allocation3] sm:$0xff]  ;;  %v1915_v6 = vld [vmem:[%s2079_s0 + $0x10] sm:$0xff]  ;;  %s1971_s5 = sand.u32 1, %s1671_s19   ;;  %s1248_s23 = sshll.u32 %s1792_s22, 4  ;;  %vm905_vm1 = vcmask 130048  }
  0x3b   : > { %v1901_v4 = vld [vmem:[%s2079_s0] sm:$0xff]  ;;  %v1908_v5 = vld [vmem:[%s2079_s0 + $0x8] sm:$0xff]  ;;  %v1922_v7 = vld [vmem:[%s2079_s0 + $0x18] sm:$0xff]  ;;  %s598_s15 = scalar_select %p597_p13, %s1792_s22, 1 }
  0x3c   : > { %639 = vmatpush.msra.mxu0 %v611_v1  ;;  %v605_v12 = vld [vmem:[%s2080_s1] sm:$0xff]  ;;  %v606_v13 = vld [vmem:[%s2080_s1 + $0x8] sm:$0xff]  ;;  %v607_v14 = vld [vmem:[%s2080_s1 + $0x10] sm:$0xff]  ;;  %s1229_s25 = sshll.u32 %s1971_s5, 4  ;;  %s799_s27 = scalar_lea.vmem [#allocation2], %s1248_s23 }
  0x3d   : > { %v608_v15 = vld [vmem:[%s2080_s1 + $0x18] sm:$0xff]  ;;  %v710_v17 = vld [vmem:[#allocation8 + $0x10] sm:$0xff]  ;;  %v709_v18 = vld [vmem:[#allocation8 + $0x8] sm:$0xff]  ;;  %s1231_s20 = sshll.u32 %s598_s15, 3  ;;  %s1978_s13 = scalar_lea.vmem [#allocation14], %s1229_s25 }
  0x3e   : > { %640 = vmatpush.msra.mxu0 %v610_v2  ;;  %v711_v16 = vld [vmem:[#allocation8 + $0x18] sm:$0xff]  ;;  %v708_v19 = vld [vmem:[#allocation8] sm:$0xff]  ;;  %v656_v25 = vld [vmem:[#allocation6 + $0x8] sm:$0xff]  ;;  %s600_s17 = scalar_lea.vmem %s2085_s6, %s1231_s20  ;;  %s1038_s16 = scalar_lea.hbm %s2093_s14, %s1248_s23 }
  0x3f   : > { %736 = vmatpush.msra.mxu2 %v711_v16  ;;  %v655_v20 = vld [vmem:[#allocation6] sm:$0xff]  ;;  %v657_v30 = vld [vmem:[#allocation6 + $0x10] sm:$0xff]  ;;  %v658_v35 = vld [vmem:[#allocation6 + $0x18] sm:$0xff]  ;;  %s1041_s25 = sshll.u32 %s1038_s16, 4  ;;  %s1589_s29 = scalar_lea.hbm %s2093_s14, 32  ;;  %s1042_s25 = int_to_ptr.hbm [resolvable:$true] %s1041_s25 }
  0x40   : > { %641 = vmatpush.msra.mxu0 %v609_v3  ;;  %v753_v44 = vld [vmem:[#allocation9] sm:$0xff]  ;;  %v840_v45 = vld [vmem:[#allocation12 + $0x18] sm:$0xff]  ;;  %v839_v46 = vld [vmem:[#allocation12 + $0x10] sm:$0xff]  ;;  %s1583_s21 = sshra.s32 %s1042_s25, 4  ;;  %s1584_s21 = int_to_ptr.hbm [resolvable:$true] %s1583_s21 }
  0x41   : > { %1232 = vmatmul.msk.f32.vlgmr.msra.gmra.mxu0 %vm613_vm0, %v1901_v4  ;;  %737 = vmatpush.msra.mxu2 %v710_v17  ;;  %v838_v49 = vld [vmem:[#allocation12 + $0x8] sm:$0xff]  ;;  %v837_v51 = vld [vmem:[#allocation12] sm:$0xff]  ;;  %v808_v56 = vld [vmem:[#allocation11 + $0x18] sm:$0xff]  ;;  %s1585_s26 = scalar_lea.hbm %s1584_s21, 16  ;;  %p1590_p3 = scmp.lt.s32.totalorder %s1584_s21, %s2093_s14 }
  0x42   : > { %v754_v53 = vld [vmem:[#allocation9 + $0x8] sm:$0xff]  ;;  %828 = vmatpush.msrb.mxu0 %v808_v56  ;;  %v755_v59 = vld [vmem:[#allocation9 + $0x10] sm:$0xff]  ;;  %v805_v0 = vld [vmem:[#allocation11] sm:$0xff]  ;;  %p1586_p0 = scmp.ne.s32.totalorder %s1584_s21, %s1585_s26  ;;  %p1591_p4 = scmp.lt.s32.totalorder %s1589_s29, %s1585_s26 }
  0x43   : > { %738 = vmatpush.msra.mxu2 %v709_v18  ;;  %v807_v60 = vld [vmem:[#allocation11 + $0x10] sm:$0xff]  ;;  %v806_v61 = vld [vmem:[#allocation11 + $0x8] sm:$0xff]  ;;  %v1963_v1 = vld [vmem:[%s600_s17] sm:$0xff]  ;;  %s1039_s17 = sshll.u32 %s1978_s13, 4  ;;  %s1040_s17 = int_to_ptr.vmem [resolvable:$true] %s1039_s17 }
  0x44   : > { %829 = vmatpush.msrb.mxu0 %v807_v60  ;;  %p1587_p1 = pnand %p1586_p0, %p1809_p5  ;;  %p1592_p7 = por %p1591_p4, %p1590_p3 }
  0x45   : > { %739 = vmatpush.msra.mxu2 %v708_v19 }
  0x46   : > { %830 = vmatpush.msrb.mxu0 %v806_v61  ;;  %p1588_p2 = pneg %p1587_p1 }
  0x48   : > { %831 = vmatpush.msrb.mxu0 %v805_v0  ;;  %p1593_p8 = pnand %p1592_p7, %p1588_p2 }
  0x49   : > { %1233 = vmatmul.msk.f32.gmra.mxu0 %vm613_vm0, %v1908_v5 }
  0x51   : > { %1234 = vmatmul.msk.f32.gmra.mxu0 %vm613_vm0, %v1915_v6 }
  0x59   : > { %1235 = vmatmul.msk.f32.gmra.mxu0 %vm613_vm0, %v1922_v7 }
  0x61   : > { %1249 = vmatmul.msk.f32.vlgmr.msrb.gmra.mxu0 %vm613_vm0, %v1963_v1 }
  0xbe   : > { %v643_v8 = vpop.f32.mrf.mxu0 }
  0xc6   : > { %v646_v9 = vpop.f32.mrf.mxu0 }
  0xce   : > { %v649_v10 = vpop.f32.mrf.mxu0 }
  0xd6   : > { %v652_v11 = vpop.f32.mrf.mxu0 }
  0xd7   : > { %683 = vmatpush.msra.mxu1 %v652_v11 }
  0xd9   : > { %684 = vmatpush.msra.mxu1 %v649_v10 }
  0xdb   : > { %685 = vmatpush.msra.mxu1 %v646_v9 }
  0xdd   : > { %686 = vmatpush.msra.mxu1 %v643_v8 }
  0xde   : > { %1236 = vmatmul.msk.f32.vlgmr.msra.gmra.mxu1 %vm613_vm0, %v605_v12  ;;  %v833_v16 = vpop.f32.mrf.mxu0 }
  0xdf   : > { %863 = vmatpush.msrb.mxu1 %v840_v45 }
  0xe1   : > { %864 = vmatpush.msrb.mxu1 %v839_v46 }
  0xe3   : > { %865 = vmatpush.msrb.mxu1 %v838_v49 }
  0xe5   : > { %866 = vmatpush.msrb.mxu1 %v837_v51 }
  0xe6   : > { %1237 = vmatmul.msk.f32.gmra.mxu1 %vm613_vm0, %v606_v13 }
  0xee   : > { %1238 = vmatmul.msk.f32.gmra.mxu1 %vm613_vm0, %v607_v14 }
  0xf6   : > { %1239 = vmatmul.msk.f32.gmra.mxu1 %vm613_vm0, %v608_v15 }
 0x15b   : > { %v688_v21 = vpop.f32.mrf.mxu1 }
 0x15c   : > { %v689_v22 = vadd.f32 %v688_v21, %v655_v20 }
 0x15e   : > { %v700_v23 = vmax.f32 %v689_v22, 0.0 }
 0x160   : > { %v704_v24 = vadd.f32 %v700_v23, %v1901_v4 }
 0x162   : > { %1240 = vmatmul.msk.f32.vlgmr.msra.gmra.mxu2 %vm613_vm0, %v704_v24 }
 0x163   : > { %v691_v26 = vpop.f32.mrf.mxu1 }
 0x164   : > { %v692_v27 = vadd.f32 %v691_v26, %v656_v25 }
 0x166   : > { %v701_v28 = vmax.f32 %v692_v27, 0.0 }
 0x168   : > { %v705_v29 = vadd.f32 %v701_v28, %v1908_v5 }
 0x16a   : > { %1241 = vmatmul.msk.f32.gmra.mxu2 %vm613_vm0, %v705_v29  ;;  %v943_v29 = vld [vmem:[%s2090_s11 + $0x18] sm:$0xff] }
 0x16b   : > { %v694_v31 = vpop.f32.mrf.mxu1 }
 0x16c   : > { %v695_v32 = vadd.f32 %v694_v31, %v657_v30  ;;  %v942_v30 = vld [vmem:[%s2090_s11 + $0x10] sm:$0xff]  ;;  %v947_v31 = vld [vmem:[%s2091_s12 + $0x18] sm:$0xff] }
 0x16d   : > { %963 = vmatpush.msra.mxu0 %v947_v31 }
 0x16e   : > { %v702_v33 = vmax.f32 %v695_v32, 0.0  ;;  %v946_v32 = vld [vmem:[%s2091_s12 + $0x10] sm:$0xff] }
 0x16f   : > { %964 = vmatpush.msra.mxu0 %v946_v32 }
 0x170   : > { %v706_v34 = vadd.f32 %v702_v33, %v1915_v6  ;;  %v941_v33 = vld [vmem:[%s2090_s11 + $0x8] sm:$0xff] }
 0x172   : > { %1242 = vmatmul.msk.f32.gmra.mxu2 %vm613_vm0, %v706_v34  ;;  %v945_v34 = vld [vmem:[%s2091_s12 + $0x8] sm:$0xff] }
 0x173   : > { %v697_v36 = vpop.f32.mrf.mxu1  ;;  %965 = vmatpush.msra.mxu0 %v945_v34 }
 0x174   : > { %v698_v37 = vadd.f32 %v697_v36, %v658_v35  ;;  %v940_v35 = vld [vmem:[%s2090_s11] sm:$0xff] }
 0x176   : > { %v703_v38 = vmax.f32 %v698_v37, 0.0 }
 0x178   : > { %v707_v39 = vadd.f32 %v703_v38, %v1922_v7 }
 0x17a   : > { %1243 = vmatmul.msk.f32.gmra.mxu2 %vm613_vm0, %v707_v39  ;;  %v944_v39 = vld [vmem:[%s2091_s12] sm:$0xff] }
 0x17b   : > { %966 = vmatpush.msra.mxu0 %v944_v39 }
 0x1e5   : > { %v741_v40 = vpop.f32.mrf.mxu2 }
 0x1ed   : > { %v744_v41 = vpop.f32.mrf.mxu2 }
 0x1f5   : > { %v747_v42 = vpop.f32.mrf.mxu2 }
 0x1fd   : > { %v750_v43 = vpop.f32.mrf.mxu2 }
 0x1fe   : > { %769 = vmatpush.msra.mxu3 %v750_v43 }
 0x200   : > { %770 = vmatpush.msra.mxu3 %v747_v42 }
 0x202   : > { %771 = vmatpush.msra.mxu3 %v744_v41 }
 0x204   : > { %772 = vmatpush.msra.mxu3 %v741_v40 }
 0x205   : > { %1244 = vmatmul.msk.f32.vlgmr.msra.gmra.mxu3 %vm613_vm0, %v605_v12  ;;  %v1376_v12 = vld [vmem:[%s2089_s10] ss:$0 sm:$0xff] }
 0x20d   : > { %1245 = vmatmul.msk.f32.gmra.mxu3 %vm613_vm0, %v606_v13 }
 0x215   : > { %1246 = vmatmul.msk.f32.gmra.mxu3 %vm613_vm0, %v607_v14  ;;  %v1377_v14 = vld [vmem:[%s2087_s8] ss:$0 sm:$0xff] }
 0x216   : > { %v834_v19 = vadd.f32 %v1377_v14, %v833_v16 }
 0x218   : > { %v836_v21 = vmax.f32 %v834_v19, 0.0 }
 0x21d   : > { %1247 = vmatmul.msk.f32.gmra.mxu3 %vm613_vm0, %v608_v15 }
 0x288   : > { %v774_v47 = vpop.f32.mrf.mxu3 }
 0x289   : > { %v775_v48 = vadd.f32 %v774_v47, %v753_v44 }
 0x28b   : > { %v786_v50 = vmax.f32 %v775_v48, 0.0 }
 0x28d   : > { %v790_v52 = vadd.f32 %v786_v50, %v1901_v4  ;;  %v756_v4 = vld [vmem:[#allocation9 + $0x18] sm:$0xff] }
 0x28f   : > { %794 = vst.msk [vmem:[#allocation2] sm:$0xff] %vm613_vm0, %v790_v52 }
 0x290   : > { %v777_v54 = vpop.f32.mrf.mxu3 }
 0x291   : > { %v778_v55 = vadd.f32 %v777_v54, %v754_v53 }
 0x293   : > { %v787_v57 = vmax.f32 %v778_v55, 0.0 }
 0x295   : > { %v791_v58 = vadd.f32 %v787_v57, %v1908_v5 }
 0x297   : > { %795 = vst.msk [vmem:[#allocation2 + $0x8] sm:$0xff] %vm613_vm0, %v791_v58 }
 0x298   : > { %v780_v62 = vpop.f32.mrf.mxu3 }
 0x299   : > { %v781_v63 = vadd.f32 %v780_v62, %v755_v59 }
 0x29b   : > { %v788_v2 = vmax.f32 %v781_v63, 0.0 }
 0x29d   : > { %v792_v3 = vadd.f32 %v788_v2, %v1915_v6 }
 0x29f   : > { %796 = vst.msk [vmem:[#allocation2 + $0x10] sm:$0xff] %vm613_vm0, %v792_v3 }
 0x2a0   : > { %v783_v5 = vpop.f32.mrf.mxu3 }
 0x2a1   : > { %v784_v8 = vadd.f32 %v783_v5, %v756_v4 }
 0x2a3   : > { %v789_v9 = vmax.f32 %v784_v8, 0.0 }
 0x2a5   : > { %v793_v10 = vadd.f32 %v789_v9, %v1922_v7 }
 0x2a7   : > { %797 = vst.msk [vmem:[#allocation2 + $0x18] sm:$0xff] %vm613_vm0, %v793_v10 }
 0x2ae   : > { %v800_v6 = vld [vmem:[%s799_s27] sm:$0xff]  ;;  %v801_v11 = vld [vmem:[%s799_s27 + $0x8] sm:$0xff]  ;;  %s1022_s27 = scalar_lea.sflag [#allocation5], %s1971_s5 }
 0x2af   : > { %802 = vst.msk [vmem:[%s1978_s13] sm:$0xff] %vm613_vm0, %v800_v6  ;;  %1250 = vmatmul.msk.f32.vlgmr.msrb.gmra.mxu1 %vm613_vm0, %v800_v6  ;;  %934 = vmatpush.msrb.mxu3 %v801_v11 }
 0x2b0   : > { %803 = vst.msk [vmem:[%s1978_s13 + $0x8] sm:$0xff] %vm613_vm0, %v801_v11 }
 0x2b1   : > { %935 = vmatpush.msrb.mxu3 %v800_v6 }
 0x2b7   : > { %1251 = vmatmul.msk.f32.gmra.mxu1 %vm613_vm0, %v801_v11 }
 0x32c   : > { %v868_v7 = vpop.f32.mrf.mxu1 }
 0x32d   : > { %v869_v17 = vadd.f32 %v1376_v12, %v868_v7 }
 0x32f   : > { %v874_v20 = vmax.f32 %v869_v17, 0.0 }
 0x334   : > { %v871_v13 = vpop.f32.mrf.mxu1 }
 0x335   : > { %v872_v15 = vadd.f32 %v1376_v12, %v871_v13 }
 0x337   : > { %v875_v18 = vmax.f32 %v872_v15, 0.0 }
 0x339   : > { %1252 = vmatpush.xpose.msk.msrb.mxu2 %vm613_vm0, %v875_v18 }
 0x33d   : > { %1253 = vmatpush.xpose.msk.msrb.mxu2 %vm613_vm0, %v874_v20 }
 0x340   : > { %1254 = vmatmul.msk.f32.vlgmr.msrb.gmra.mxu2 %vm613_vm0, %v836_v21 }
 0x341   : > { %983 = vmatpush.msra.mxu2 %v943_v29 }
 0x343   : > { %984 = vmatpush.msra.mxu2 %v942_v30 }
 0x345   : > { %985 = vmatpush.msra.mxu2 %v941_v33 }
 0x347   : > { %986 = vmatpush.msra.mxu2 %v940_v35 }
 0x348   : > { %1257 = vmatmul.msk.f32.vlgmr.msra.gmra.mxu2 %vm613_vm0, %v1963_v1 }
 0x3c3   : > { %v902_v22 = vpop.f32.mrf.mxu2 }
 0x3c4   : > { %v906_v23 = vsel %vm905_vm1, %v902_v22, -inf }
 0x3c5   : > { %907 = vmax.xlane.f32.xlu0 %v906_v23 }
 0x438   : > { %v908_v24 = vpop.xlane.xlu0 %907 }
 0x439   : > { %v909_v25 = vsub.f32 %v902_v22, %v908_v24 }
 0x43b   : > { %v910_v26 = vmul.f32 1.442695, %v909_v25 }
 0x43d   : > { %1379 = vpow2.f32 %v910_v26 }
 0x443   : > { %v1380_v27 = vpop.eup %1379 }
 0x444   : > { %v912_v28 = vsel %vm905_vm1, %v1380_v27, 0.0 }
 0x445   : > { %913 = vadd.xlane.f32.xlu0 %v912_v28 }
 0x4b8   : > { %v914_v36 = vpop.xlane.xlu0 %913 }
 0x4b9   : > { %1381 = vrcp.f32 %v914_v36 }
 0x4bf   : > { %v1382_v37 = vpop.eup %1381 }
 0x4c0   : > { %v916_v38 = vmul.f32 %v1382_v37, %v1380_v27 }
 0x4c2   : > { %1255 = vmatmul.msk.f32.vlgmr.msrb.gmra.mxu3 %vm905_vm1, %v916_v38 }
 0x545   : > { %v937_v40 = vpop.f32.mrf.mxu3 }
 0x546   : > { %1256 = vmatmul.msk.f32.vlgmr.msra.gmra.mxu0 %vm613_vm0, %v937_v40 }
 0x547   : > { %1596 = shalt.err (!%p1593_p8)
}
 0x548   : > { %s1689_s23 = smov 128   ;;  %s1690_s13 = smov 8   ;;  %v988_v41 = vpop.f32.mrf.mxu2  ;;  %v996_v50 = vlaneseq }
 0x549   : > { %1291 = dma.vmem_to_hbm [thread:$0]  (%p1809_p5), %s1040_s17, 256, %s1042_s25, %s1022_s27, %s1689_s23, %s1689_s23, %s1690_s13  }
 0x54a   : > { %s2118_s16 = sld [smem:[#allocation31_spill]]  ;;  %s1230_s21 = sshll.u32 %s1971_s5, 3  ;;  %v997_v53 = vand.u32 127, %v996_v50 }
 0x54b   : > { %s1263_s26 = sshll.u32 %s1792_s22, 3  ;;  %s2119_s27 = sld [smem:[#allocation32_spill]] }
 0x54c   : > { %s596_s18 = scalar_lea.vmem [#allocation15], %s1230_s21  ;;  %vm998_vm4 = vcmp.lt.s32.totalorder %v997_v53, 8  ;;  %s1027_s22 = scalar_lea.sflag [#allocation16], %s1971_s5 }
 0x54d   : > { %s1056_s29 = sshll.u32 %s596_s18, 4  ;;  %s1057_s29 = int_to_ptr.vmem [resolvable:$true] %s1056_s29 }
 0x550   : > { %v1378_v42 = vld [vmem:[%s2118_s16] ss:$0 sm:$0xff] }
 0x551   : > { %s1054_s24 = scalar_lea.hbm %s2119_s27, %s1263_s26  ;;  %s1617_s30 = scalar_lea.hbm %s2119_s27, 16 }
 0x552   : > { %s1058_s3 = sshll.u32 %s1054_s24, 4  ;;  %s1059_s3 = int_to_ptr.hbm [resolvable:$true] %s1058_s3 }
 0x553   : > { %s1611_s15 = sshra.s32 %s1059_s3, 4  ;;  %s1612_s15 = int_to_ptr.hbm [resolvable:$true] %s1611_s15 }
 0x554   : > { %s1613_s23 = scalar_lea.hbm %s1612_s15, 8  ;;  %p1618_p12 = scmp.lt.s32.totalorder %s1612_s15, %s2119_s27 }
 0x555   : > { %p1614_p9 = scmp.ne.s32.totalorder %s1612_s15, %s1613_s23  ;;  %p1619_p13 = scmp.lt.s32.totalorder %s1617_s30, %s1613_s23 }
 0x557   : > { %p1615_p10 = pnand %p1614_p9, %p1809_p5  ;;  %p1620_p0 = por %p1619_p13, %p1618_p12 }
 0x559   : > { %p1616_p11 = pneg %p1615_p10 }
 0x55b   : > { %p1621_p1 = pnand %p1620_p0, %p1616_p11 }
 0x5c3   : > { %v968_v43 = vpop.f32.mrf.mxu0 }
 0x5c4   : > { %v989_v44 = vadd.f32 %v988_v41, %v968_v43 }
 0x5c6   : > { %v995_v45 = vadd.f32 %v1378_v42, %v989_v44 }
 0x5c8   : > { %v1258_v46 = vmul.f32 -1.442695, %v995_v45 }
 0x5ca   : > { %1383 = vpow2.f32 %v1258_v46 }
 0x5d0   : > { %v1384_v47 = vpop.eup %1383 }
 0x5d1   : > { %v1002_v48 = vadd.f32 1.0, %v1384_v47 }
 0x5d3   : > { %1385 = vrcp.f32 %v1002_v48  ;;  %v1014_v54 = vand.u32 2147483648, %v1002_v48  ;;  %v1012_v56 = vand.u32 2147483647, %v1002_v48  ;;  %vm1008_vm3 = vweird.f32 %v1002_v48 }
 0x5d4   : > { %1387 = vtanh.f32 %v995_v45 }
 0x5d5   : > { %v1015_v58 = vor.u32 1.1754944e-38, %v1014_v54  ;;  %vm1013_vm6 = vcmp.eq.f32.partialorder %v1012_v56, 8.507059e+37 }
 0x5d9   : > { %v1386_v49 = vpop.eup %1385 }
 0x5da   : > { %v1004_v51 = vmul.f32 %v1386_v49, %v1002_v48  ;;  %vm1009_vm2 = vweird.f32 %v1386_v49  ;;  %v1388_v60 = vpop.eup %1387 }
 0x5db   : > { %vm1010_vm5 = vmor %vm1008_vm3, %vm1009_vm2 }
 0x5dc   : > { %v1005_v52 = vsub.f32 1.0, %v1004_v51 }
 0x5de   : > { %v1006_v55 = vmul.f32 %v1386_v49, %v1005_v52 }
 0x5e0   : > { %v1007_v57 = vadd.f32 %v1386_v49, %v1006_v55 }
 0x5e2   : > { %v1011_v59 = vsel %vm1010_vm5, %v1386_v49, %v1007_v57 }
 0x5e3   : > { %v1016_v61 = vsel %vm1013_vm6, %v1015_v58, %v1011_v59 }
 0x5e4   : > { %v1019_v62 = vsel %vm998_vm4, %v1016_v61, %v1388_v60 }
 0x5e5   : > { %1020 = vst.msk [vmem:[%s596_s18] sm:$0xff] %vm905_vm1, %v1019_v62 }
 0x5e6   : > { %1624 = shalt.err (!%p1621_p1)
}
 0x5e7   : > { %1292 = dma.vmem_to_hbm [thread:$0]  (%p1809_p5), %s1057_s29, 128, %s1059_s3, %s1027_s22  }
 0x5e8 PF: > { %s2120_s5 = sld [smem:[#allocation25_spill]] }
 0x5e9   : > { %s2121_s26 = sld [smem:[#allocation23_spill]] }
 0x5ee   : > { %p1333_p2 = scmp.ge.s32.totalorder %s2120_s5, 2 }
 0x5ef   : > { %s1070_s25 = sand.u32 1, %s2121_s26  }
 0x5f0   : > { %p1315_p3 = pnand %p1333_p2, %p1813_p6  ;;  %s1071_s24 = scalar_lea.sflag [#allocation5], %s1070_s25 }
 0x5f2   : > { %p1316_p4 = pneg %p1315_p3 }
 0x5f4   : > { %1658 = dma.done.wait (%p1316_p4), %s1071_s24, 256  }
 0x5f5   : > { %1660 = vsyncadd (%p1316_p4), %s1071_s24, 4294967040  ;;  %s1081_s18 = scalar_lea.sflag [#allocation16], %s1070_s25 }
 0x5f6   : > { %1662 = dma.done.wait (%p1316_p4), %s1081_s18, 128  }
 0x5f7   : > { %1664 = vsyncadd (%p1316_p4), %s1081_s18, 4294967168  ;;  %s2123_s21 = sld [smem:[#allocation26_spill]]  ;;  %s2126_s18 = smov %s1671_s19 }
 0x5f8   : > { %s2124_s15 = sld [smem:[#allocation24_spill]] }
 0x5f9   : > { %s2125_s20 = sld [smem:[#allocation27_spill]] }
 0x5fd   : > { %p33_p5 = scmp.ge.s32.totalorder %s2123_s21, 4  }
 0x5fe   : > { %s2127_s19 = smov %s2124_s15 }
 0x5ff   :  { %35 = sbr.rel (!%p33_p5) target bundleno = 14 (0xe), region = 154 }
 0x604   :  { %1087 = vsyncpa [#allocation4], 1 }
 0x605   :  { %1089 = vsyncpa [#allocation4 + $0x1], 1 }
 0x606   :  { %1090 = vsyncpa [#allocation7], 1 }
 0x607   :  { %1091 = vsyncpa [#allocation10], 1 }
 0x608   :  { %1092 = vsyncpa [#allocation13], 1 }
 0x609   :  { %1093 = vsyncpa [#allocation5], 1 }
 0x60a   :  { %1095 = vsyncpa [#allocation5 + $0x1], 1 }
 0x60b   :  { %1096 = vsyncpa [#allocation16], 1 }
 0x60c   :  { %1098 = vsyncpa [#allocation16 + $0x1], 1 }

</bundles_post_ra>
